<compile_context>
chip_gen: v7x
topology: tpu7x:2x2x1
jax: 0.10.0
libtpu: 0.0.40
codegen_flags: <defaults>
</compile_context>

<pallas_src>
import functools

import jax
import jax.numpy as jnp
from jax import lax
from jax.experimental import pallas as pl
from jax.experimental.pallas import tpu as pltpu


_VMEM_LIMIT = 40 * 1024 * 1024   # ok on v5e/v6e (128 MiB) and v7x (64 MiB) physical


def _round_up(x, m):
    return ((x + m - 1) // m) * m


def _split(dim, target, align):
    """Return (tile, padded_dim, grid) with tile * grid == padded_dim >= dim.

    If dim <= target a single full-dim block is used (always a legal BlockSpec);
    otherwise tiles are `align`-aligned and work is balanced across the grid."""
    if dim <= target:
        return dim, dim, 1
    g = _round_up(dim, target) // target
    tile = _round_up(_round_up(dim, g) // g, align)
    return tile, tile * g, g


# ---------------------------------------------------------------------------
# Pass 1: per-feature batch statistics (mean, rsqrt(unbiased std)).
# grid = (D_tiles, N_tiles); N is the last ("arbitrary") reduction axis.
# Outputs are resident (1, tk) accumulators finalized on the last N step.
# ---------------------------------------------------------------------------
def _stats_kernel(za_ref, zb_ref, ma_ref, sa_ref, mb_ref, sb_ref,
                  shift_a, shift_b, *, n_rows, mask_rows):
    n_idx = pl.program_id(1)
    tm = za_ref.shape[0]

    za = za_ref[...].astype(jnp.float32)
    zb = zb_ref[...].astype(jnp.float32)

    @pl.when(n_idx == 0)
    def _():
        ma_ref[...] = jnp.zeros_like(ma_ref)
        sa_ref[...] = jnp.zeros_like(sa_ref)
        mb_ref[...] = jnp.zeros_like(mb_ref)
        sb_ref[...] = jnp.zeros_like(sb_ref)
        # First-row pivot for the shifted sum-of-squares (row 0 is always valid).
        shift_a[...] = za[0:1, :]
        shift_b[...] = zb[0:1, :]

    da = za - shift_a[...]
    db = zb - shift_b[...]
    sq_a = da * da
    sq_b = db * db
    if mask_rows:  # remainder tile on the batch axis (trace-time decision)
        row_ok = (n_idx * tm
                  + lax.broadcasted_iota(jnp.int32, (tm, 1), 0)) < n_rows
        za = jnp.where(row_ok, za, 0.0)
        zb = jnp.where(row_ok, zb, 0.0)
        sq_a = jnp.where(row_ok, sq_a, 0.0)
        sq_b = jnp.where(row_ok, sq_b, 0.0)

    ma_ref[...] += jnp.sum(za, axis=0, keepdims=True)
    sa_ref[...] += jnp.sum(sq_a, axis=0, keepdims=True)
    mb_ref[...] += jnp.sum(zb, axis=0, keepdims=True)
    sb_ref[...] += jnp.sum(sq_b, axis=0, keepdims=True)

    @pl.when(n_idx == pl.num_programs(1) - 1)
    def _():
        n_f = jnp.float32(n_rows)
        mean_a = ma_ref[...] / n_f
        dm_a = mean_a - shift_a[...]
        var_a = (sa_ref[...] - n_f * dm_a * dm_a) / (n_f - 1.0)
        ma_ref[...] = mean_a
        sa_ref[...] = lax.rsqrt(var_a)
        mean_b = mb_ref[...] / n_f
        dm_b = mean_b - shift_b[...]
        var_b = (sb_ref[...] - n_f * dm_b * dm_b) / (n_f - 1.0)
        mb_ref[...] = mean_b
        sb_ref[...] = lax.rsqrt(var_b)


# ---------------------------------------------------------------------------
# Pass 2: one-time normalization + bf16 staging, zero-padded to the pass-3 grid.
# grid = (N_pad/tm, D_pad/tk), both axes "parallel".
# ---------------------------------------------------------------------------
def _stage_kernel(za_ref, zb_ref, ma_ref, sa_ref, mb_ref, sb_ref,
                  oa_ref, ob_ref, *, n_rows, n_feat, mask_rows, mask_cols):
    r = pl.program_id(0)
    c = pl.program_id(1)
    tr, tc = oa_ref.shape

    za = (za_ref[...].astype(jnp.float32) - ma_ref[...]) * sa_ref[...]
    zb = (zb_ref[...].astype(jnp.float32) - mb_ref[...]) * sb_ref[...]

    if mask_rows or mask_cols:
        ok = None
        if mask_rows:
            ok = (r * tr + lax.broadcasted_iota(jnp.int32, (tr, 1), 0)) < n_rows
        if mask_cols:
            cok = (c * tc + lax.broadcasted_iota(jnp.int32, (1, tc), 1)) < n_feat
            ok = cok if ok is None else jnp.logical_and(ok, cok)
        # Explicit zeros in the padding: pass 3 then needs no masks in its k loop
        # and garbage/NaN in padded stats columns can never leak into the matmul.
        za = jnp.where(ok, za, 0.0)
        zb = jnp.where(ok, zb, 0.0)

    oa_ref[...] = za.astype(oa_ref.dtype)
    ob_ref[...] = zb.astype(ob_ref.dtype)


# ---------------------------------------------------------------------------
# Pass 3: pure NT matmul + fused label mask + squared-diff reduction.
# grid = (N_pad/tm, N_pad/tn, D_pad/tk); one scalar partial per (i, j) tile.
# ---------------------------------------------------------------------------
def _loss_kernel(za_ref, zb_ref, lcol_ref, lrow_ref, o_ref, acc_ref, *,
                 n_rows, inv_d, mask_pad):
    i = pl.program_id(0)
    j = pl.program_id(1)
    k = pl.program_id(2)

    @pl.when(k == 0)
    def _():
        acc_ref[...] = jnp.zeros_like(acc_ref)

    # Pure MXU work in the inner loop: operands were normalized/cast at staging.
    acc_ref[...] += lax.dot_general(
        za_ref[...], zb_ref[...],
        dimension_numbers=(((1,), (1,)), ((), ())),
        preferred_element_type=jnp.float32)

    @pl.when(k == pl.num_programs(2) - 1)
    def _():
        tm, tn = acc_ref.shape
        c = acc_ref[...] * jnp.float32(inv_d)              # fold 1/D once per tile
        eq = lcol_ref[...] == lrow_ref[...]                # (tm,1)==(1,tn) -> (tm,tn)
        diff = jnp.where(eq, c - 1.0, c)                   # fused mask, no m tensor
        sq = diff * diff
        if mask_pad:  # rows/cols >= N exist only when N was padded (trace-time)
            row_ok = (i * tm + lax.broadcasted_iota(jnp.int32, (tm, 1), 0)) < n_rows
            col_ok = (j * tn + lax.broadcasted_iota(jnp.int32, (1, tn), 1)) < n_rows
            sq = jnp.where(row_ok, sq, 0.0)
            sq = jnp.where(col_ok, sq, 0.0)
        tile_loss = jnp.sum(sq)
        # Scalar partial at [0, 0] of this tile's lane-aligned (8, 128) output
        # block; the rest is zero so a plain wrapper-side sum recovers the loss.
        pos = (lax.broadcasted_iota(jnp.int32, (8, 128), 0)
               + lax.broadcasted_iota(jnp.int32, (8, 128), 1))
        o_ref[...] = jnp.where(pos == 0, tile_loss, 0.0)


def modified_barlow_twins_loss(z_a, z_b, labels, *, stage_dtype=jnp.bfloat16):
    """z_a, z_b: (N, D) float32/bfloat16; labels: (N,) int. Returns f32 scalar."""
    N, D = z_a.shape
    assert z_b.shape == (N, D)
    labels = labels.astype(jnp.int32)

    # ---- tiling ------------------------------------------------------------
    # Row tiles: 512 until N >= 2048, then 1024 (keeps gi >= 2 for v7x megacore
    # as soon as N > 512).  128-aligned so the (1, tn) label-row block is legal.
    n_target = 1024 if N >= 2048 else 512
    tm, n_pad, gi = _split(N, n_target, 128)
    tn, gj = tm, gi
    # Shared feature (k) tile for stats / staging / matmul, 128-aligned.
    tk, d_pad, gk = _split(D, 1024, 128)

    mask_n = n_pad != N
    mask_d = d_pad != D

    # ---- pass 1: per-feature mean / rsqrt(unbiased std) --------------------
    tms_target = 1024 if tk <= 512 else 512          # cap per-step block ~2 MiB f32
    tms, _, gns = _split(N, tms_target, 8)
    mask_rows_stats = gns * tms != N

    stat_out = jax.ShapeDtypeStruct((1, d_pad), jnp.float32)
    stat_spec = pl.BlockSpec((1, tk), lambda d, n: (0, d))
    mean_a, scale_a, mean_b, scale_b = pl.pallas_call(
        functools.partial(_stats_kernel, n_rows=N, mask_rows=mask_rows_stats),
        out_shape=[stat_out] * 4,
        grid_spec=pltpu.PrefetchScalarGridSpec(
            num_scalar_prefetch=0,
            grid=(gk, gns),
            in_specs=[pl.BlockSpec((tms, tk), lambda d, n: (n, d)),
                      pl.BlockSpec((tms, tk), lambda d, n: (n, d))],
            out_specs=[stat_spec, stat_spec, stat_spec, stat_spec],
            scratch_shapes=[pltpu.VMEM((1, tk), jnp.float32),
                            pltpu.VMEM((1, tk), jnp.float32)],
        ),
        compiler_params=pltpu.CompilerParams(
            dimension_semantics=("parallel", "arbitrary"),
            vmem_limit_bytes=_VMEM_LIMIT),
    )(z_a, z_b)

    # ---- pass 2: normalize once, stage bf16 padded to (n_pad, d_pad) -------
    stage_out = jax.ShapeDtypeStruct((n_pad, d_pad), stage_dtype)
    feat_spec = pl.BlockSpec((1, tk), lambda r, c: (0, c))
    z_spec_in = pl.BlockSpec((tm, tk), lambda r, c: (r, c))
    z_spec_out = pl.BlockSpec((tm, tk), lambda r, c: (r, c))
    za_s, zb_s = pl.pallas_call(
        functools.partial(_stage_kernel, n_rows=N, n_feat=D,
                          mask_rows=mask_n, mask_cols=mask_d),
        out_shape=[stage_out, stage_out],
        grid_spec=pltpu.PrefetchScalarGridSpec(
            num_scalar_prefetch=0,
            grid=(n_pad // tm, gk),
            in_specs=[z_spec_in, z_spec_in,
                      feat_spec, feat_spec, feat_spec, feat_spec],
            out_specs=[z_spec_out, z_spec_out],
        ),
        compiler_params=pltpu.CompilerParams(
            dimension_semantics=("parallel", "parallel"),
            vmem_limit_bytes=_VMEM_LIMIT),
    )(z_a, z_b, mean_a, scale_a, mean_b, scale_b)

    # ---- pass 3: tiled correlation + loss ----------------------------------
    lab = labels
    if mask_n:
        lab = jnp.concatenate([lab, jnp.zeros((n_pad - N,), jnp.int32)])
    lab_col = lab.reshape(n_pad, 1)
    lab_row = lab.reshape(1, n_pad)

    # Label BlockSpecs are k-independent, so Pallas only re-DMAs them when the
    # (i, j) tile changes — negligible traffic.
    partials = pl.pallas_call(
        functools.partial(_loss_kernel, n_rows=N, inv_d=1.0 / D, mask_pad=mask_n),
        out_shape=jax.ShapeDtypeStruct((gi * 8, gj * 128), jnp.float32),
        grid_spec=pltpu.PrefetchScalarGridSpec(
            num_scalar_prefetch=0,
            grid=(gi, gj, gk),
            in_specs=[
                pl.BlockSpec((tm, tk), lambda i, j, k: (i, k)),   # z_a_norm tile
                pl.BlockSpec((tn, tk), lambda i, j, k: (j, k)),   # z_b_norm tile
                pl.BlockSpec((tm, 1), lambda i, j, k: (i, 0)),    # labels column
                pl.BlockSpec((1, tn), lambda i, j, k: (0, j)),    # labels row
            ],
            out_specs=pl.BlockSpec((8, 128), lambda i, j, k: (i, j)),
            scratch_shapes=[pltpu.VMEM((tm, tn), jnp.float32)],
        ),
        compiler_params=pltpu.CompilerParams(
            dimension_semantics=("parallel", "parallel", "arbitrary"),
            vmem_limit_bytes=_VMEM_LIMIT),
    )(za_s, zb_s, lab_col, lab_row)

    return jnp.sum(partials)


def _reference(z_a, z_b, labels):
    # Pure-JAX reference mirroring the PyTorch module (true-f32 matmul).
    z_a = z_a.astype(jnp.float32)
    z_b = z_b.astype(jnp.float32)
    D = z_a.shape[1]
    za_n = (z_a - z_a.mean(0)) / jnp.std(z_a, axis=0, ddof=1)
    zb_n = (z_b - z_b.mean(0)) / jnp.std(z_b, axis=0, ddof=1)
    c = jnp.dot(za_n, zb_n.T, precision=lax.Precision.HIGHEST) / D
    m = (labels[:, None] == labels[None, :]).astype(jnp.float32)
    return jnp.sum((c - m) ** 2)


if __name__ == "__main__":
    key = jax.random.PRNGKey(0)
    k1, k2, k3 = jax.random.split(key, 3)

    # Small shapes consistent with the module: batch N=8, feature dim D=32.
    N, D = 8, 32
    z_a = jax.random.normal(k1, (N, D), dtype=jnp.float32)
    z_b = jax.random.normal(k2, (N, D), dtype=jnp.float32)
    labels = jax.random.randint(k3, (N,), 0, 3, dtype=jnp.int32)

    loss_fn = jax.jit(modified_barlow_twins_loss)
    loss = jax.block_until_ready(loss_fn(z_a, z_b, labels))
    ref = _reference(z_a, z_b, labels)
    # bf16-staged operands (full-rate MXU) vs true-f32 reference -> ~1e-3 rel.
    assert jnp.allclose(loss, ref, rtol=5e-3, atol=2e-2), (loss, ref)

    # Second check: shapes that exercise the multi-tile grid, row/column padding
    # and the remainder masks (gi=gj=2 with tm=384, gk=2 with tk=640).
    k4, k5, k6 = jax.random.split(jax.random.PRNGKey(1), 3)
    N2, D2 = 640, 1100
    z_a2 = jax.random.normal(k4, (N2, D2), dtype=jnp.float32)
    z_b2 = jax.random.normal(k5, (N2, D2), dtype=jnp.float32)
    labels2 = jax.random.randint(k6, (N2,), 0, 7, dtype=jnp.int32)
    loss2 = jax.block_until_ready(loss_fn(z_a2, z_b2, labels2))
    ref2 = _reference(z_a2, z_b2, labels2)
    assert jnp.allclose(loss2, ref2, rtol=5e-3, atol=1e-1), (loss2, ref2)

    print("KERNEL_OK")
</pallas_src>

<mosaic_0001>
module attributes {stable_mosaic.version = 11 : i64} {
  func.func @_stage_kernel(%arg0: i32, %arg1: i32, %arg2: memref<8x32xf32, #tpu.memory_space<vmem>>, %arg3: memref<8x32xf32, #tpu.memory_space<vmem>>, %arg4: memref<1x32xf32, #tpu.memory_space<vmem>>, %arg5: memref<1x32xf32, #tpu.memory_space<vmem>>, %arg6: memref<1x32xf32, #tpu.memory_space<vmem>>, %arg7: memref<1x32xf32, #tpu.memory_space<vmem>>, %arg8: memref<8x32xbf16, #tpu.memory_space<vmem>>, %arg9: memref<8x32xbf16, #tpu.memory_space<vmem>>) attributes {dimension_semantics = [#tpu.dimension_semantics<parallel>, #tpu.dimension_semantics<parallel>], iteration_bounds = array<i64: 1, 1>, scalar_prefetch = 0 : i64, scratch_operands = 0 : i64, tpu.core_type = #tpu.core_type<tc>, window_params = [{transform_indices = @transform_0, window_bounds = array<i64: 8, 32>}, {transform_indices = @transform_1, window_bounds = array<i64: 8, 32>}, {transform_indices = @transform_2, window_bounds = array<i64: 1, 32>}, {transform_indices = @transform_3, window_bounds = array<i64: 1, 32>}, {transform_indices = @transform_4, window_bounds = array<i64: 1, 32>}, {transform_indices = @transform_5, window_bounds = array<i64: 1, 32>}, {transform_indices = @transform_6, window_bounds = array<i64: 8, 32>}, {transform_indices = @transform_7, window_bounds = array<i64: 8, 32>}]} {
    %c0 = arith.constant 0 : index
    %c0_0 = arith.constant 0 : index
    %0 = vector.load %arg2[%c0, %c0_0] : memref<8x32xf32, #tpu.memory_space<vmem>>, vector<8x32xf32>
    %c0_1 = arith.constant 0 : index
    %c0_2 = arith.constant 0 : index
    %1 = vector.load %arg4[%c0_1, %c0_2] : memref<1x32xf32, #tpu.memory_space<vmem>>, vector<1x32xf32>
    %2 = vector.broadcast %1 : vector<1x32xf32> to vector<8x32xf32>
    %3 = arith.subf %0, %2 : vector<8x32xf32>
    %c0_3 = arith.constant 0 : index
    %c0_4 = arith.constant 0 : index
    %4 = vector.load %arg5[%c0_3, %c0_4] : memref<1x32xf32, #tpu.memory_space<vmem>>, vector<1x32xf32>
    %5 = vector.broadcast %4 : vector<1x32xf32> to vector<8x32xf32>
    %6 = arith.mulf %3, %5 : vector<8x32xf32>
    %c0_5 = arith.constant 0 : index
    %c0_6 = arith.constant 0 : index
    %7 = vector.load %arg3[%c0_5, %c0_6] : memref<8x32xf32, #tpu.memory_space<vmem>>, vector<8x32xf32>
    %c0_7 = arith.constant 0 : index
    %c0_8 = arith.constant 0 : index
    %8 = vector.load %arg6[%c0_7, %c0_8] : memref<1x32xf32, #tpu.memory_space<vmem>>, vector<1x32xf32>
    %9 = vector.broadcast %8 : vector<1x32xf32> to vector<8x32xf32>
    %10 = arith.subf %7, %9 : vector<8x32xf32>
    %c0_9 = arith.constant 0 : index
    %c0_10 = arith.constant 0 : index
    %11 = vector.load %arg7[%c0_9, %c0_10] : memref<1x32xf32, #tpu.memory_space<vmem>>, vector<1x32xf32>
    %12 = vector.broadcast %11 : vector<1x32xf32> to vector<8x32xf32>
    %13 = arith.mulf %10, %12 : vector<8x32xf32>
    %14 = arith.truncf %6 : vector<8x32xf32> to vector<8x32xbf16>
    %c0_11 = arith.constant 0 : index
    %c0_12 = arith.constant 0 : index
    %15 = vector.load %arg8[%c0_11, %c0_12] : memref<8x32xbf16, #tpu.memory_space<vmem>>, vector<8x32xbf16>
    tpu.vector_store %arg8[%c0_11, %c0_12], %14 {strides = array<i32>} : memref<8x32xbf16, #tpu.memory_space<vmem>>, vector<8x32xbf16>,
    %16 = arith.truncf %13 : vector<8x32xf32> to vector<8x32xbf16>
    %c0_13 = arith.constant 0 : index
    %c0_14 = arith.constant 0 : index
    %17 = vector.load %arg9[%c0_13, %c0_14] : memref<8x32xbf16, #tpu.memory_space<vmem>>, vector<8x32xbf16>
    tpu.vector_store %arg9[%c0_13, %c0_14], %16 {strides = array<i32>} : memref<8x32xbf16, #tpu.memory_space<vmem>>, vector<8x32xbf16>,
    return
  }
  func.func @transform_0(%arg0: i32, %arg1: i32) -> (i32, i32) {
    %c0_i32 = arith.constant 0 : i32
    return %arg0, %arg1 : i32, i32
  }
  func.func @transform_1(%arg0: i32, %arg1: i32) -> (i32, i32) {
    %c0_i32 = arith.constant 0 : i32
    return %arg0, %arg1 : i32, i32
  }
  func.func @transform_2(%arg0: i32, %arg1: i32) -> (i32, i32) {
    %c0_i32 = arith.constant 0 : i32
    %c0_i32_0 = arith.constant 0 : i32
    return %c0_i32, %arg1 : i32, i32
  }
  func.func @transform_3(%arg0: i32, %arg1: i32) -> (i32, i32) {
    %c0_i32 = arith.constant 0 : i32
    %c0_i32_0 = arith.constant 0 : i32
    return %c0_i32, %arg1 : i32, i32
  }
  func.func @transform_4(%arg0: i32, %arg1: i32) -> (i32, i32) {
    %c0_i32 = arith.constant 0 : i32
    %c0_i32_0 = arith.constant 0 : i32
    return %c0_i32, %arg1 : i32, i32
  }
  func.func @transform_5(%arg0: i32, %arg1: i32) -> (i32, i32) {
    %c0_i32 = arith.constant 0 : i32
    %c0_i32_0 = arith.constant 0 : i32
    return %c0_i32, %arg1 : i32, i32
  }
  func.func @transform_6(%arg0: i32, %arg1: i32) -> (i32, i32) {
    %c0_i32 = arith.constant 0 : i32
    return %arg0, %arg1 : i32, i32
  }
  func.func @transform_7(%arg0: i32, %arg1: i32) -> (i32, i32) {
    %c0_i32 = arith.constant 0 : i32
    return %arg0, %arg1 : i32, i32
  }
}

module attributes {stable_mosaic.version = 11 : i64} {
  func.func @_loss_kernel(%arg0: i32, %arg1: i32, %arg2: i32, %arg3: memref<8x32xbf16, #tpu.memory_space<vmem>>, %arg4: memref<8x32xbf16, #tpu.memory_space<vmem>>, %arg5: memref<8x1xi32, #tpu.memory_space<vmem>>, %arg6: memref<1x8xi32, #tpu.memory_space<vmem>>, %arg7: memref<8x128xf32, #tpu.memory_space<vmem>>, %arg8: memref<8x8xf32, #tpu.memory_space<vmem>>) attributes {dimension_semantics = [#tpu.dimension_semantics<parallel>, #tpu.dimension_semantics<parallel>, #tpu.dimension_semantics<arbitrary>], iteration_bounds = array<i64: 1, 1, 1>, scalar_prefetch = 0 : i64, scratch_operands = 1 : i64, tpu.core_type = #tpu.core_type<tc>, window_params = [{transform_indices = @transform_0, window_bounds = array<i64: 8, 32>}, {transform_indices = @transform_1, window_bounds = array<i64: 8, 32>}, {transform_indices = @transform_2, window_bounds = array<i64: 8, 1>}, {transform_indices = @transform_3, window_bounds = array<i64: 1, 8>}, {transform_indices = @transform_4, window_bounds = array<i64: 8, 128>}]} {
    %c0_i32 = arith.constant 0 : i32
    %0 = arith.cmpi eq, %arg2, %c0_i32 : i32
    %1 = arith.extui %0 : i1 to i32
    %c0_i32_0 = arith.constant 0 : i32
    %2 = arith.cmpi ne, %1, %c0_i32_0 : i32
    scf.if %2 {
      %cst_10 = arith.constant 0.000000e+00 : f32
      %12 = vector.broadcast %cst_10 : f32 to vector<8x8xf32>
      %c0_11 = arith.constant 0 : index
      %c0_12 = arith.constant 0 : index
      %13 = vector.load %arg8[%c0_11, %c0_12] : memref<8x8xf32, #tpu.memory_space<vmem>>, vector<8x8xf32>
      tpu.vector_store %arg8[%c0_11, %c0_12], %12 {strides = array<i32>} : memref<8x8xf32, #tpu.memory_space<vmem>>, vector<8x8xf32>,
    } else {
    }
    %c0 = arith.constant 0 : index
    %c0_1 = arith.constant 0 : index
    %3 = vector.load %arg8[%c0, %c0_1] : memref<8x8xf32, #tpu.memory_space<vmem>>, vector<8x8xf32>
    %c0_2 = arith.constant 0 : index
    %c0_3 = arith.constant 0 : index
    %4 = vector.load %arg3[%c0_2, %c0_3] : memref<8x32xbf16, #tpu.memory_space<vmem>>, vector<8x32xbf16>
    %c0_4 = arith.constant 0 : index
    %c0_5 = arith.constant 0 : index
    %5 = vector.load %arg4[%c0_4, %c0_5] : memref<8x32xbf16, #tpu.memory_space<vmem>>, vector<8x32xbf16>
    %cst = arith.constant dense<0.000000e+00> : vector<8x8xf32>
    %6 = tpu.matmul %4, %5, %cst {dimension_numbers = #tpu.dot_dimension_numbers<[1], [1], [0], [0], [0, 0, 1, 0], [], []>} : vector<8x32xbf16>, vector<8x32xbf16>, vector<8x8xf32> -> vector<8x8xf32>
    %7 = arith.addf %3, %6 : vector<8x8xf32>
    %c0_6 = arith.constant 0 : index
    %c0_7 = arith.constant 0 : index
    %8 = vector.load %arg8[%c0_6, %c0_7] : memref<8x8xf32, #tpu.memory_space<vmem>>, vector<8x8xf32>
    tpu.vector_store %arg8[%c0_6, %c0_7], %7 {strides = array<i32>} : memref<8x8xf32, #tpu.memory_space<vmem>>, vector<8x8xf32>,
    %c0_i32_8 = arith.constant 0 : i32
    %9 = arith.cmpi eq, %arg2, %c0_i32_8 : i32
    %10 = arith.extui %9 : i1 to i32
    %c0_i32_9 = arith.constant 0 : i32
    %11 = arith.cmpi ne, %10, %c0_i32_9 : i32
    scf.if %11 {
      %c0_10 = arith.constant 0 : index
      %c0_11 = arith.constant 0 : index
      %12 = vector.load %arg8[%c0_10, %c0_11] : memref<8x8xf32, #tpu.memory_space<vmem>>, vector<8x8xf32>
      %cst_12 = arith.constant 3.125000e-02 : f32
      %13 = vector.broadcast %cst_12 : f32 to vector<8x8xf32>
      %14 = arith.mulf %12, %13 : vector<8x8xf32>
      %c0_13 = arith.constant 0 : index
      %c0_14 = arith.constant 0 : index
      %15 = vector.load %arg5[%c0_13, %c0_14] : memref<8x1xi32, #tpu.memory_space<vmem>>, vector<8x1xi32>
      %c0_15 = arith.constant 0 : index
      %c0_16 = arith.constant 0 : index
      %16 = vector.load %arg6[%c0_15, %c0_16] : memref<1x8xi32, #tpu.memory_space<vmem>>, vector<1x8xi32>
      %17 = vector.broadcast %15 : vector<8x1xi32> to vector<8x8xi32>
      %18 = vector.broadcast %16 : vector<1x8xi32> to vector<8x8xi32>
      %19 = arith.cmpi eq, %17, %18 : vector<8x8xi32>
      %cst_17 = arith.constant 1.000000e+00 : f32
      %20 = vector.broadcast %cst_17 : f32 to vector<8x8xf32>
      %21 = arith.subf %14, %20 : vector<8x8xf32>
      %22 = arith.select %19, %21, %14 : vector<8x8xi1>, vector<8x8xf32>
      %23 = arith.mulf %22, %22 : vector<8x8xf32>
      %24 = vector.shape_cast %23 : vector<8x8xf32> to vector<1x8x8xf32>
      %cst_18 = arith.constant dense<0.000000e+00> : vector<1xf32>
      %25 = vector.multi_reduction <add>, %24, %cst_18 [1, 2] : vector<1x8x8xf32> to vector<1xf32>
      %26 = vector.shape_cast %25 : vector<1xf32> to vector<1x1x1xf32>
      %27 = vector.extract %26[0, 0, 0] : f32 from vector<1x1x1xf32>
      %28 = tpu.iota {dimensions = array<i32: 0>} : vector<8x128xi32>
      %29 = tpu.iota {dimensions = array<i32: 1>} : vector<8x128xi32>
      %30 = arith.addi %28, %29 : vector<8x128xi32>
      %c0_i32_19 = arith.constant 0 : i32
      %31 = vector.broadcast %c0_i32_19 : i32 to vector<8x128xi32>
      %32 = arith.cmpi eq, %30, %31 : vector<8x128xi32>
      %cst_20 = arith.constant 0.000000e+00 : f32
      %33 = vector.broadcast %27 : f32 to vector<8x128xf32>
      %34 = vector.broadcast %cst_20 : f32 to vector<8x128xf32>
      %35 = arith.select %32, %33, %34 : vector<8x128xi1>, vector<8x128xf32>
      %c0_21 = arith.constant 0 : index
      %c0_22 = arith.constant 0 : index
      %36 = vector.load %arg7[%c0_21, %c0_22] : memref<8x128xf32, #tpu.memory_space<vmem>>, vector<8x128xf32>
      tpu.vector_store %arg7[%c0_21, %c0_22], %35 {strides = array<i32>} : memref<8x128xf32, #tpu.memory_space<vmem>>, vector<8x128xf32>,
    } else {
    }
    return
  }
  func.func @transform_0(%arg0: i32, %arg1: i32, %arg2: i32) -> (i32, i32) {
    %c0_i32 = arith.constant 0 : i32
    return %arg0, %arg2 : i32, i32
  }
  func.func @transform_1(%arg0: i32, %arg1: i32, %arg2: i32) -> (i32, i32) {
    %c0_i32 = arith.constant 0 : i32
    return %arg1, %arg2 : i32, i32
  }
  func.func @transform_2(%arg0: i32, %arg1: i32, %arg2: i32) -> (i32, i32) {
    %c0_i32 = arith.constant 0 : i32
    %c0_i32_0 = arith.constant 0 : i32
    return %arg0, %c0_i32 : i32, i32
  }
  func.func @transform_3(%arg0: i32, %arg1: i32, %arg2: i32) -> (i32, i32) {
    %c0_i32 = arith.constant 0 : i32
    %c0_i32_0 = arith.constant 0 : i32
    return %c0_i32, %arg1 : i32, i32
  }
  func.func @transform_4(%arg0: i32, %arg1: i32, %arg2: i32) -> (i32, i32) {
    %c0_i32 = arith.constant 0 : i32
    return %arg0, %arg1 : i32, i32
  }
}

module attributes {stable_mosaic.version = 11 : i64} {
  func.func @_stats_kernel(%arg0: i32, %arg1: i32, %arg2: memref<8x32xf32, #tpu.memory_space<vmem>>, %arg3: memref<8x32xf32, #tpu.memory_space<vmem>>, %arg4: memref<1x32xf32, #tpu.memory_space<vmem>>, %arg5: memref<1x32xf32, #tpu.memory_space<vmem>>, %arg6: memref<1x32xf32, #tpu.memory_space<vmem>>, %arg7: memref<1x32xf32, #tpu.memory_space<vmem>>, %arg8: memref<1x32xf32, #tpu.memory_space<vmem>>, %arg9: memref<1x32xf32, #tpu.memory_space<vmem>>) attributes {dimension_semantics = [#tpu.dimension_semantics<parallel>, #tpu.dimension_semantics<arbitrary>], iteration_bounds = array<i64: 1, 1>, scalar_prefetch = 0 : i64, scratch_operands = 2 : i64, tpu.core_type = #tpu.core_type<tc>, window_params = [{transform_indices = @transform_0, window_bounds = array<i64: 8, 32>}, {transform_indices = @transform_1, window_bounds = array<i64: 8, 32>}, {transform_indices = @transform_2, window_bounds = array<i64: 1, 32>}, {transform_indices = @transform_3, window_bounds = array<i64: 1, 32>}, {transform_indices = @transform_4, window_bounds = array<i64: 1, 32>}, {transform_indices = @transform_5, window_bounds = array<i64: 1, 32>}]} {
    %c0 = arith.constant 0 : index
    %c0_0 = arith.constant 0 : index
    %0 = vector.load %arg2[%c0, %c0_0] : memref<8x32xf32, #tpu.memory_space<vmem>>, vector<8x32xf32>
    %c0_1 = arith.constant 0 : index
    %c0_2 = arith.constant 0 : index
    %1 = vector.load %arg3[%c0_1, %c0_2] : memref<8x32xf32, #tpu.memory_space<vmem>>, vector<8x32xf32>
    %c0_i32 = arith.constant 0 : i32
    %2 = arith.cmpi eq, %arg1, %c0_i32 : i32
    %3 = arith.extui %2 : i1 to i32
    %c0_i32_3 = arith.constant 0 : i32
    %4 = arith.cmpi ne, %3, %c0_i32_3 : i32
    scf.if %4 {
      %cst_29 = arith.constant 0.000000e+00 : f32
      %36 = vector.broadcast %cst_29 : f32 to vector<1x32xf32>
      %c0_30 = arith.constant 0 : index
      %c0_31 = arith.constant 0 : index
      %37 = vector.load %arg4[%c0_30, %c0_31] : memref<1x32xf32, #tpu.memory_space<vmem>>, vector<1x32xf32>
      tpu.vector_store %arg4[%c0_30, %c0_31], %36 {strides = array<i32>} : memref<1x32xf32, #tpu.memory_space<vmem>>, vector<1x32xf32>,
      %cst_32 = arith.constant 0.000000e+00 : f32
      %38 = vector.broadcast %cst_32 : f32 to vector<1x32xf32>
      %c0_33 = arith.constant 0 : index
      %c0_34 = arith.constant 0 : index
      %39 = vector.load %arg5[%c0_33, %c0_34] : memref<1x32xf32, #tpu.memory_space<vmem>>, vector<1x32xf32>
      tpu.vector_store %arg5[%c0_33, %c0_34], %38 {strides = array<i32>} : memref<1x32xf32, #tpu.memory_space<vmem>>, vector<1x32xf32>,
      %cst_35 = arith.constant 0.000000e+00 : f32
      %40 = vector.broadcast %cst_35 : f32 to vector<1x32xf32>
      %c0_36 = arith.constant 0 : index
      %c0_37 = arith.constant 0 : index
      %41 = vector.load %arg6[%c0_36, %c0_37] : memref<1x32xf32, #tpu.memory_space<vmem>>, vector<1x32xf32>
      tpu.vector_store %arg6[%c0_36, %c0_37], %40 {strides = array<i32>} : memref<1x32xf32, #tpu.memory_space<vmem>>, vector<1x32xf32>,
      %cst_38 = arith.constant 0.000000e+00 : f32
      %42 = vector.broadcast %cst_38 : f32 to vector<1x32xf32>
      %c0_39 = arith.constant 0 : index
      %c0_40 = arith.constant 0 : index
      %43 = vector.load %arg7[%c0_39, %c0_40] : memref<1x32xf32, #tpu.memory_space<vmem>>, vector<1x32xf32>
      tpu.vector_store %arg7[%c0_39, %c0_40], %42 {strides = array<i32>} : memref<1x32xf32, #tpu.memory_space<vmem>>, vector<1x32xf32>,
      %44 = vector.extract_strided_slice %0 {offsets = [0, 0], sizes = [1, 32], strides = [1, 1]} : vector<8x32xf32> to vector<1x32xf32>
      %c0_41 = arith.constant 0 : index
      %c0_42 = arith.constant 0 : index
      %45 = vector.load %arg8[%c0_41, %c0_42] : memref<1x32xf32, #tpu.memory_space<vmem>>, vector<1x32xf32>
      tpu.vector_store %arg8[%c0_41, %c0_42], %44 {strides = array<i32>} : memref<1x32xf32, #tpu.memory_space<vmem>>, vector<1x32xf32>,
      %46 = vector.extract_strided_slice %1 {offsets = [0, 0], sizes = [1, 32], strides = [1, 1]} : vector<8x32xf32> to vector<1x32xf32>
      %c0_43 = arith.constant 0 : index
      %c0_44 = arith.constant 0 : index
      %47 = vector.load %arg9[%c0_43, %c0_44] : memref<1x32xf32, #tpu.memory_space<vmem>>, vector<1x32xf32>
      tpu.vector_store %arg9[%c0_43, %c0_44], %46 {strides = array<i32>} : memref<1x32xf32, #tpu.memory_space<vmem>>, vector<1x32xf32>,
    } else {
    }
    %c0_4 = arith.constant 0 : index
    %c0_5 = arith.constant 0 : index
    %5 = vector.load %arg8[%c0_4, %c0_5] : memref<1x32xf32, #tpu.memory_space<vmem>>, vector<1x32xf32>
    %6 = vector.broadcast %5 : vector<1x32xf32> to vector<8x32xf32>
    %7 = arith.subf %0, %6 : vector<8x32xf32>
    %c0_6 = arith.constant 0 : index
    %c0_7 = arith.constant 0 : index
    %8 = vector.load %arg9[%c0_6, %c0_7] : memref<1x32xf32, #tpu.memory_space<vmem>>, vector<1x32xf32>
    %9 = vector.broadcast %8 : vector<1x32xf32> to vector<8x32xf32>
    %10 = arith.subf %1, %9 : vector<8x32xf32>
    %11 = arith.mulf %7, %7 : vector<8x32xf32>
    %12 = arith.mulf %10, %10 : vector<8x32xf32>
    %c0_8 = arith.constant 0 : index
    %c0_9 = arith.constant 0 : index
    %13 = vector.load %arg4[%c0_8, %c0_9] : memref<1x32xf32, #tpu.memory_space<vmem>>, vector<1x32xf32>
    %cst = arith.constant dense<0.000000e+00> : vector<32xf32>
    %14 = vector.multi_reduction <add>, %0, %cst [0] : vector<8x32xf32> to vector<32xf32>
    %15 = vector.shape_cast %14 : vector<32xf32> to vector<1x32xf32>
    %16 = arith.addf %13, %15 : vector<1x32xf32>
    %c0_10 = arith.constant 0 : index
    %c0_11 = arith.constant 0 : index
    %17 = vector.load %arg4[%c0_10, %c0_11] : memref<1x32xf32, #tpu.memory_space<vmem>>, vector<1x32xf32>
    tpu.vector_store %arg4[%c0_10, %c0_11], %16 {strides = array<i32>} : memref<1x32xf32, #tpu.memory_space<vmem>>, vector<1x32xf32>,
    %c0_12 = arith.constant 0 : index
    %c0_13 = arith.constant 0 : index
    %18 = vector.load %arg5[%c0_12, %c0_13] : memref<1x32xf32, #tpu.memory_space<vmem>>, vector<1x32xf32>
    %cst_14 = arith.constant dense<0.000000e+00> : vector<32xf32>
    %19 = vector.multi_reduction <add>, %11, %cst_14 [0] : vector<8x32xf32> to vector<32xf32>
    %20 = vector.shape_cast %19 : vector<32xf32> to vector<1x32xf32>
    %21 = arith.addf %18, %20 : vector<1x32xf32>
    %c0_15 = arith.constant 0 : index
    %c0_16 = arith.constant 0 : index
    %22 = vector.load %arg5[%c0_15, %c0_16] : memref<1x32xf32, #tpu.memory_space<vmem>>, vector<1x32xf32>
    tpu.vector_store %arg5[%c0_15, %c0_16], %21 {strides = array<i32>} : memref<1x32xf32, #tpu.memory_space<vmem>>, vector<1x32xf32>,
    %c0_17 = arith.constant 0 : index
    %c0_18 = arith.constant 0 : index
    %23 = vector.load %arg6[%c0_17, %c0_18] : memref<1x32xf32, #tpu.memory_space<vmem>>, vector<1x32xf32>
    %cst_19 = arith.constant dense<0.000000e+00> : vector<32xf32>
    %24 = vector.multi_reduction <add>, %1, %cst_19 [0] : vector<8x32xf32> to vector<32xf32>
    %25 = vector.shape_cast %24 : vector<32xf32> to vector<1x32xf32>
    %26 = arith.addf %23, %25 : vector<1x32xf32>
    %c0_20 = arith.constant 0 : index
    %c0_21 = arith.constant 0 : index
    %27 = vector.load %arg6[%c0_20, %c0_21] : memref<1x32xf32, #tpu.memory_space<vmem>>, vector<1x32xf32>
    tpu.vector_store %arg6[%c0_20, %c0_21], %26 {strides = array<i32>} : memref<1x32xf32, #tpu.memory_space<vmem>>, vector<1x32xf32>,
    %c0_22 = arith.constant 0 : index
    %c0_23 = arith.constant 0 : index
    %28 = vector.load %arg7[%c0_22, %c0_23] : memref<1x32xf32, #tpu.memory_space<vmem>>, vector<1x32xf32>
    %cst_24 = arith.constant dense<0.000000e+00> : vector<32xf32>
    %29 = vector.multi_reduction <add>, %12, %cst_24 [0] : vector<8x32xf32> to vector<32xf32>
    %30 = vector.shape_cast %29 : vector<32xf32> to vector<1x32xf32>
    %31 = arith.addf %28, %30 : vector<1x32xf32>
    %c0_25 = arith.constant 0 : index
    %c0_26 = arith.constant 0 : index
    %32 = vector.load %arg7[%c0_25, %c0_26] : memref<1x32xf32, #tpu.memory_space<vmem>>, vector<1x32xf32>
    tpu.vector_store %arg7[%c0_25, %c0_26], %31 {strides = array<i32>} : memref<1x32xf32, #tpu.memory_space<vmem>>, vector<1x32xf32>,
    %c0_i32_27 = arith.constant 0 : i32
    %33 = arith.cmpi eq, %arg1, %c0_i32_27 : i32
    %34 = arith.extui %33 : i1 to i32
    %c0_i32_28 = arith.constant 0 : i32
    %35 = arith.cmpi ne, %34, %c0_i32_28 : i32
    scf.if %35 {
      %c0_29 = arith.constant 0 : index
      %c0_30 = arith.constant 0 : index
      %36 = vector.load %arg4[%c0_29, %c0_30] : memref<1x32xf32, #tpu.memory_space<vmem>>, vector<1x32xf32>
      %cst_31 = arith.constant 8.000000e+00 : f32
      %37 = vector.broadcast %cst_31 : f32 to vector<1x32xf32>
      %38 = arith.divf %36, %37 : vector<1x32xf32>
      %c0_32 = arith.constant 0 : index
      %c0_33 = arith.constant 0 : index
      %39 = vector.load %arg8[%c0_32, %c0_33] : memref<1x32xf32, #tpu.memory_space<vmem>>, vector<1x32xf32>
      %40 = arith.subf %38, %39 : vector<1x32xf32>
      %c0_34 = arith.constant 0 : index
      %c0_35 = arith.constant 0 : index
      %41 = vector.load %arg5[%c0_34, %c0_35] : memref<1x32xf32, #tpu.memory_space<vmem>>, vector<1x32xf32>
      %cst_36 = arith.constant 8.000000e+00 : f32
      %42 = vector.broadcast %cst_36 : f32 to vector<1x32xf32>
      %43 = arith.mulf %42, %40 : vector<1x32xf32>
      %44 = arith.mulf %43, %40 : vector<1x32xf32>
      %45 = arith.subf %41, %44 : vector<1x32xf32>
      %cst_37 = arith.constant 8.000000e+00 : f32
      %cst_38 = arith.constant 1.000000e+00 : f32
      %46 = arith.subf %cst_37, %cst_38 : f32
      %47 = vector.broadcast %46 : f32 to vector<1x32xf32>
      %48 = arith.divf %45, %47 : vector<1x32xf32>
      %c0_39 = arith.constant 0 : index
      %c0_40 = arith.constant 0 : index
      %49 = vector.load %arg4[%c0_39, %c0_40] : memref<1x32xf32, #tpu.memory_space<vmem>>, vector<1x32xf32>
      tpu.vector_store %arg4[%c0_39, %c0_40], %38 {strides = array<i32>} : memref<1x32xf32, #tpu.memory_space<vmem>>, vector<1x32xf32>,
      %50 = math.rsqrt %48 : vector<1x32xf32>
      %c0_41 = arith.constant 0 : index
      %c0_42 = arith.constant 0 : index
      %51 = vector.load %arg5[%c0_41, %c0_42] : memref<1x32xf32, #tpu.memory_space<vmem>>, vector<1x32xf32>
      tpu.vector_store %arg5[%c0_41, %c0_42], %50 {strides = array<i32>} : memref<1x32xf32, #tpu.memory_space<vmem>>, vector<1x32xf32>,
      %c0_43 = arith.constant 0 : index
      %c0_44 = arith.constant 0 : index
      %52 = vector.load %arg6[%c0_43, %c0_44] : memref<1x32xf32, #tpu.memory_space<vmem>>, vector<1x32xf32>
      %cst_45 = arith.constant 8.000000e+00 : f32
      %53 = vector.broadcast %cst_45 : f32 to vector<1x32xf32>
      %54 = arith.divf %52, %53 : vector<1x32xf32>
      %c0_46 = arith.constant 0 : index
      %c0_47 = arith.constant 0 : index
      %55 = vector.load %arg9[%c0_46, %c0_47] : memref<1x32xf32, #tpu.memory_space<vmem>>, vector<1x32xf32>
      %56 = arith.subf %54, %55 : vector<1x32xf32>
      %c0_48 = arith.constant 0 : index
      %c0_49 = arith.constant 0 : index
      %57 = vector.load %arg7[%c0_48, %c0_49] : memref<1x32xf32, #tpu.memory_space<vmem>>, vector<1x32xf32>
      %cst_50 = arith.constant 8.000000e+00 : f32
      %58 = vector.broadcast %cst_50 : f32 to vector<1x32xf32>
      %59 = arith.mulf %58, %56 : vector<1x32xf32>
      %60 = arith.mulf %59, %56 : vector<1x32xf32>
      %61 = arith.subf %57, %60 : vector<1x32xf32>
      %cst_51 = arith.constant 8.000000e+00 : f32
      %cst_52 = arith.constant 1.000000e+00 : f32
      %62 = arith.subf %cst_51, %cst_52 : f32
      %63 = vector.broadcast %62 : f32 to vector<1x32xf32>
      %64 = arith.divf %61, %63 : vector<1x32xf32>
      %c0_53 = arith.constant 0 : index
      %c0_54 = arith.constant 0 : index
      %65 = vector.load %arg6[%c0_53, %c0_54] : memref<1x32xf32, #tpu.memory_space<vmem>>, vector<1x32xf32>
      tpu.vector_store %arg6[%c0_53, %c0_54], %54 {strides = array<i32>} : memref<1x32xf32, #tpu.memory_space<vmem>>, vector<1x32xf32>,
      %66 = math.rsqrt %64 : vector<1x32xf32>
      %c0_55 = arith.constant 0 : index
      %c0_56 = arith.constant 0 : index
      %67 = vector.load %arg7[%c0_55, %c0_56] : memref<1x32xf32, #tpu.memory_space<vmem>>, vector<1x32xf32>
      tpu.vector_store %arg7[%c0_55, %c0_56], %66 {strides = array<i32>} : memref<1x32xf32, #tpu.memory_space<vmem>>, vector<1x32xf32>,
    } else {
    }
    return
  }
  func.func @transform_0(%arg0: i32, %arg1: i32) -> (i32, i32) {
    %c0_i32 = arith.constant 0 : i32
    return %arg1, %arg0 : i32, i32
  }
  func.func @transform_1(%arg0: i32, %arg1: i32) -> (i32, i32) {
    %c0_i32 = arith.constant 0 : i32
    return %arg1, %arg0 : i32, i32
  }
  func.func @transform_2(%arg0: i32, %arg1: i32) -> (i32, i32) {
    %c0_i32 = arith.constant 0 : i32
    %c0_i32_0 = arith.constant 0 : i32
    return %c0_i32, %arg0 : i32, i32
  }
  func.func @transform_3(%arg0: i32, %arg1: i32) -> (i32, i32) {
    %c0_i32 = arith.constant 0 : i32
    %c0_i32_0 = arith.constant 0 : i32
    return %c0_i32, %arg0 : i32, i32
  }
  func.func @transform_4(%arg0: i32, %arg1: i32) -> (i32, i32) {
    %c0_i32 = arith.constant 0 : i32
    %c0_i32_0 = arith.constant 0 : i32
    return %c0_i32, %arg0 : i32, i32
  }
  func.func @transform_5(%arg0: i32, %arg1: i32) -> (i32, i32) {
    %c0_i32 = arith.constant 0 : i32
    %c0_i32_0 = arith.constant 0 : i32
    return %c0_i32, %arg0 : i32, i32
  }
}

</mosaic_0001>

<bundles_post_ra>
// kernel: modified_barlow_twins_loss.5
= control target key start
LH: loop header
LB: loop body
LE: loop exit
PB: predicated region body
PF: predicated region fallthrough
CT: control target
= control target key end

     0   :  { %vm27_vm0 = vcmask 261120   ;;  %v135_v0 = vmov 0.0   ;;  %vm136_vm1 = vmmov 0   ;;  %vm22_vm2 = vcmask 64512   ;;  %s183_s1 = inlined_call_operand.vmem [shape: bf16[8,32], index: 1, kind: input, shape index: {}]   ;;  %s184_s2 = inlined_call_operand.vmem [shape: s32[8,1], index: 2, kind: input, shape index: {}]   ;;  %s185_s0 = inlined_call_operand.vmem [shape: bf16[8,32], index: 0, kind: input, shape index: {}]   ;;  %s186_s3 = inlined_call_operand.vmem [shape: s32[1,8], index: 3, kind: input, shape index: {}]   ;;  %s187_s4 = inlined_call_operand.vmem [shape: f32[8,128], index: 4, kind: output, shape index: {}]  }
   0x1   :  { %123 = vmatprep.subr.bf16.mxu0 %v135_v0  ;;  %v26_v1 = vld [vmem:[%s183_s1] sm:$0xf]  ;;  %125 = vmatprep.mubr.msk.bf16.mxu0 %vm136_vm1, %v135_v0  ;;  %v137_v4 = vmov 0   ;;  %23 = vst.msk [vmem:[#allocation2] sm:$0xff] %vm22_vm2, %v135_v0  ;;  %v105_v27 = vlaneseq }
   0x2   :  { %v82_v2 = vld [vmem:[%s184_s2] sm:$0xff]  ;;  %v32_v3 = vsel %vm27_vm0, %v26_v1, 0  ;;  %134 = vset.pattern.permute.xlu0 %v137_v4 }
   0x3   :  { %124 = vmatpush3.bf16.xpose.msra.mxu0 %v32_v3  ;;  %85 = vperm.xlu0 %134, %v82_v2   ;;  %v25_v5 = vld [vmem:[%s185_s0] sm:$0xf]  ;;  %v106_v28 = vshrl.u32 %v105_v27, 7  ;;  %v108_v29 = vand.u32 127, %v105_v27 }
   0x4   :  { %v119_v12 = vld [vmem:[%s186_s3] ss:$0 sm:$0xff] }
   0x5   :  { %v109_v30 = vadd.s32 %v108_v29, %v106_v28 }
   0x7   :  { %vm110_vm4 = vcmp.eq.s32.totalorder %v109_v30, 0 }
   0x8   :  { %v24_v6 = vld [vmem:[#allocation2] sm:$0xff] }
   0xa   :  { %126 = vmatmul.mubr.msk.bf16.vlgmr.msra.gmra.mrb[0].mxu0 %vm27_vm0, %v25_v5 }
  0x82   :  { %v86_v13 = vpop.permute.xlu0 %85 }
  0x83   :  { %vm91_vm3 = vcmp.eq.s32.totalorder %v86_v13, %v119_v12 }
  0xdd   :  { %v68_v7 = vpop.f32.mrb[0].mxu0 }
  0xde   :  { %v74_v8 = vadd.f32 %v68_v7, %v24_v6  ;;  %v127_v9 = vpop.f32.mrb[1].mxu0 }
  0xdf   :  { %v71_v10 = vpop.f32.mrb[2].mxu0 }
  0xe0   :  { %76 = vst.msk [vmem:[#allocation2] sm:$0xff] %vm22_vm2, %v74_v8  ;;  %v128_v11 = vpop.f32.mrb[3].mxu0 }
  0xe7   :  { %v80_v14 = vld [vmem:[#allocation2] sm:$0xff] }
  0xe8   :  { %v81_v15 = vmul.f32 0.03125, %v80_v14 }
  0xea   :  { %v120_v16 = vadd.f32 -1.0, %v81_v15 }
  0xec   :  { %v93_v17 = vsel %vm91_vm3, %v120_v16, %v81_v15 }
  0xed   :  { %v94_v18 = vmul.f32 %v93_v17, %v93_v17 }
  0xef   :  { %v95_v19 = vsel %vm22_vm2, %v94_v18, 0.0 }
  0xf0   :  { %96 = vadd.xlane.f32.xlu0 %v95_v19 }
 0x17d   :  { %v97_v20 = vpop.xlane.xlu0 %96 }
 0x17e   :  { %v98_v21 = vrot.slane %v97_v20, 4 }
 0x180   :  { %v99_v22 = vadd.f32 %v98_v21, %v97_v20 }
 0x182   :  { %v100_v23 = vrot.slane %v99_v22, 2 }
 0x184   :  { %v101_v24 = vadd.f32 %v100_v23, %v99_v22 }
 0x186   :  { %v102_v25 = vrot.slane %v101_v24, 1 }
 0x188   :  { %v103_v26 = vadd.f32 %v102_v25, %v101_v24 }
 0x18a   :  { %129 = vpush %v103_v26 }
 0x1bb   :  { %s130_s0 = spop %129 }
 0x1bc   :  { %v111_v31 = vstv %s130_s0 }
 0x1bd   :  { %v112_v32 = vsel %vm110_vm4, %v111_v31, 0.0 }
 0x1be   :  { %113 = vst [vmem:[%s187_s4] sm:$0xff] %v112_v32 }

// kernel: modified_barlow_twins_loss.4
= control target key start
LH: loop header
LB: loop body
LE: loop exit
PB: predicated region body
PF: predicated region fallthrough
CT: control target
= control target key end

     0   :  { %vm60_vm0 = vcmask 257024   ;;  %s140_s0 = inlined_call_operand.vmem [shape: f32[8,32], index: 0, kind: input, shape index: {}]   ;;  %s141_s2 = inlined_call_operand.vmem [shape: f32[1,32], index: 2, kind: input, shape index: {}]   ;;  %s142_s3 = inlined_call_operand.vmem [shape: f32[1,32], index: 3, kind: input, shape index: {}]   ;;  %s143_s1 = inlined_call_operand.vmem [shape: f32[8,32], index: 1, kind: input, shape index: {}]   ;;  %s144_s4 = inlined_call_operand.vmem [shape: f32[1,32], index: 4, kind: input, shape index: {}]   ;;  %s145_s5 = inlined_call_operand.vmem [shape: f32[1,32], index: 5, kind: input, shape index: {}]   ;;  %s146_s6 = inlined_call_operand.vmem [shape: bf16[8,32], index: 6, kind: output, shape index: {0}]   ;;  %s147_s7 = inlined_call_operand.vmem [shape: bf16[8,32], index: 7, kind: output, shape index: {1}]  }
   0x1   :  { %v25_v0 = vld [vmem:[%s140_s0] sm:$0xff] }
   0x2   :  { %v72_v1 = vld [vmem:[%s141_s2] ss:$0 sm:$0xff] }
   0x3   :  { %v73_v2 = vld [vmem:[%s142_s3] ss:$0 sm:$0xff]  ;;  %v33_v3 = vsub.f32 %v25_v0, %v72_v1 }
   0x4   :  { %v42_v4 = vld [vmem:[%s143_s1] sm:$0xff] }
   0x5   :  { %v74_v5 = vld [vmem:[%s144_s4] ss:$0 sm:$0xff]  ;;  %v41_v8 = vmul.f32 %v73_v2, %v33_v3 }
   0x6   :  { %v75_v6 = vld [vmem:[%s145_s5] ss:$0 sm:$0xff]  ;;  %v50_v7 = vsub.f32 %v42_v4, %v74_v5 }
   0x7   :  { %v59_v10 = vpack.c.bf16 %v41_v8, %v41_v8 }
   0x8   :  { %v58_v9 = vmul.f32 %v75_v6, %v50_v7 }
   0x9   :  { %61 = vst.msk [vmem:[%s146_s6] sm:$0xf] %vm60_vm0, %v59_v10 }
   0xa   :  { %v62_v11 = vpack.c.bf16 %v58_v9, %v58_v9 }
   0xc   :  { %63 = vst.msk [vmem:[%s147_s7] sm:$0xf] %vm60_vm0, %v62_v11 }

// kernel: modified_barlow_twins_loss.3
= control target key start
LH: loop header
LB: loop body
LE: loop exit
PB: predicated region body
PF: predicated region fallthrough
CT: control target
= control target key end

     0   :  { %11 = vsyncpa [#allocation5], 0  ;;  %s178_s18 = smov [#allocation4]   ;;  %s303_s0 = inlined_call_operand.hbm [shape: f32[8,32], index: 0, kind: input, shape index: {}]   ;;  %s304_s1 = inlined_call_operand.vmem [shape: f32[8,32], index: 1, kind: input, shape index: {}]   ;;  %s305_s2 = inlined_call_operand.vmem [shape: f32[1,32], index: 2, kind: output, shape index: {0}]   ;;  %s306_s3 = inlined_call_operand.vmem [shape: f32[1,32], index: 3, kind: output, shape index: {1}]   ;;  %s307_s4 = inlined_call_operand.vmem [shape: f32[1,32], index: 4, kind: output, shape index: {2}]   ;;  %s308_s5 = inlined_call_operand.vmem [shape: f32[1,32], index: 5, kind: output, shape index: {3}]  }
   0x1   :  { %s18_s19 = sshll.u32 %s178_s18, 4  ;;  %s154_s22 = scalar_lea.hbm %s303_s0, 128  ;;  %s19_s19 = int_to_ptr.vmem [resolvable:$true] %s18_s19 }
   0x2   :  { %p155_p0 = scmp.ne.s32.totalorder %s303_s0, %s154_s22  ;;  %p158_p1 = scmp.lt.u32.totalorder %s154_s22, %s303_s0 }
   0x4   :  { %p160_p2 = pnand %p158_p1, %p155_p0 }
   0x6   :  { %163 = shalt.err (!%p160_p2)
}
   0x7   :  { %s164_s27 = scalar_lea.vmem %s19_s19, 128  ;;  %p169_p4 = scmp.lt.s32.totalorder %s19_s19, %s19_s19 }
   0x8   :  { %p165_p3 = scmp.ne.s32.totalorder %s19_s19, %s164_s27  ;;  %p170_p5 = scmp.lt.s32.totalorder %s164_s27, %s164_s27 }
   0xa   :  { %p171_p6 = por %p170_p5, %p169_p4 }
   0xc   :  { %p172_p7 = pnand %p171_p6, %p165_p3 }
   0xe   :  { %175 = shalt.err (!%p172_p7)
}
   0xf   :  { %21 = dma.hbm_to_vmem [thread:$0]  %s303_s0, 128, %s19_s19, [#allocation5]  }
  0x10   :  { %176 = dma.done.wait [#allocation5], 128  }
  0x11   :  { %177 = vsyncadd [#allocation5], 4294967168  ;;  %vm33_vm0 = vcmask 253952   ;;  %v179_v0 = vmov 0.0   ;;  %vm59_vm1 = vcmask 261120   ;;  %v27_v1 = vld [vmem:[#allocation4] sm:$0xff] }
  0x12   :  { %34 = vst.msk [vmem:[%s305_s2] sm:$0x1] %vm33_vm0, %v179_v0  ;;  %35 = vst.msk [vmem:[%s306_s3] sm:$0x1] %vm33_vm0, %v179_v0  ;;  %v28_v2 = vld [vmem:[%s304_s1] sm:$0xff]  ;;  %v60_v3 = vsel %vm59_vm1, %v27_v1, 0.0 }
  0x13   :  { %36 = vst.msk [vmem:[%s307_s4] sm:$0x1] %vm33_vm0, %v179_v0  ;;  %37 = vst.msk [vmem:[%s308_s5] sm:$0x1] %vm33_vm0, %v179_v0  ;;  %v81_v4 = vsel %vm59_vm1, %v28_v2, 0.0  ;;  %v61_v5 = vrot.slane %v60_v3, 4 }
  0x14   :  { %38 = vst.msk [vmem:[#allocation2] sm:$0x1] %vm33_vm0, %v27_v1  ;;  %39 = vst.msk [vmem:[#allocation3] sm:$0x1] %vm33_vm0, %v28_v2  ;;  %v82_v6 = vrot.slane %v81_v4, 4 }
  0x15   :  { %v62_v7 = vadd.f32 %v61_v5, %v60_v3 }
  0x16   :  { %v83_v8 = vadd.f32 %v82_v6, %v81_v4 }
  0x17   :  { %v63_v9 = vrot.slane %v62_v7, 2 }
  0x18   :  { %v84_v10 = vrot.slane %v83_v8, 2 }
  0x19   :  { %v64_v12 = vadd.f32 %v63_v9, %v62_v7  ;;  %v58_v21 = vld [vmem:[%s305_s2] sm:$0x1] }
  0x1a   :  { %v85_v14 = vadd.f32 %v84_v10, %v83_v8  ;;  %v80_v22 = vld [vmem:[%s307_s4] sm:$0x1] }
  0x1b   :  { %v146_v11 = vld [vmem:[#allocation2] ss:$0 sm:$0xff]  ;;  %v147_v13 = vld [vmem:[#allocation3] ss:$0 sm:$0xff]  ;;  %v65_v17 = vrot.slane %v64_v12, 1 }
  0x1c   :  { %v47_v15 = vsub.f32 %v27_v1, %v146_v11  ;;  %v55_v16 = vsub.f32 %v28_v2, %v147_v13  ;;  %v86_v18 = vrot.slane %v85_v14, 1  ;;  %v70_v39 = vld [vmem:[%s306_s3] sm:$0x1]  ;;  %v119_v48 = vld [vmem:[#allocation3] sm:$0x1] }
  0x1d   :  { %v66_v23 = vadd.f32 %v65_v17, %v64_v12  ;;  %v90_v40 = vld [vmem:[%s308_s5] sm:$0x1] }
  0x1e   :  { %v56_v19 = vmul.f32 %v47_v15, %v47_v15  ;;  %v57_v20 = vmul.f32 %v55_v16, %v55_v16  ;;  %v87_v24 = vadd.f32 %v86_v18, %v85_v14  ;;  %v106_v47 = vld [vmem:[#allocation2] sm:$0x1] }
  0x1f   :  { %v67_v29 = vadd.f32 %v66_v23, %v58_v21 }
  0x20   :  { %v71_v25 = vsel %vm59_vm1, %v56_v19, 0.0  ;;  %v91_v26 = vsel %vm59_vm1, %v57_v20, 0.0  ;;  %v88_v30 = vadd.f32 %v87_v24, %v80_v22 }
  0x21   :  { %v72_v27 = vrot.slane %v71_v25, 4  ;;  %v92_v28 = vrot.slane %v91_v26, 4  ;;  %69 = vst.msk [vmem:[%s305_s2] sm:$0x1] %vm33_vm0, %v67_v29 }
  0x22   :  { %89 = vst.msk [vmem:[%s307_s4] sm:$0x1] %vm33_vm0, %v88_v30 }
  0x23   :  { %v73_v31 = vadd.f32 %v72_v27, %v71_v25  ;;  %v93_v32 = vadd.f32 %v92_v28, %v91_v26 }
  0x25   :  { %v74_v33 = vrot.slane %v73_v31, 2  ;;  %v94_v34 = vrot.slane %v93_v32, 2 }
  0x27   :  { %v75_v35 = vadd.f32 %v74_v33, %v73_v31  ;;  %v95_v36 = vadd.f32 %v94_v34, %v93_v32 }
  0x28   :  { %v103_v41 = vld [vmem:[%s305_s2] sm:$0x1] }
  0x29   :  { %v76_v37 = vrot.slane %v75_v35, 1  ;;  %v96_v38 = vrot.slane %v95_v36, 1  ;;  %v117_v42 = vld [vmem:[%s307_s4] sm:$0x1]  ;;  %v105_v45 = vmul.f32 0.125, %v103_v41 }
  0x2a   :  { %v118_v46 = vmul.f32 0.125, %v117_v42 }
  0x2b   :  { %v77_v43 = vadd.f32 %v76_v37, %v75_v35  ;;  %v97_v44 = vadd.f32 %v96_v38, %v95_v36  ;;  %v107_v51 = vsub.f32 %v105_v45, %v106_v47  ;;  %114 = vst.msk [vmem:[%s305_s2] sm:$0x1] %vm33_vm0, %v105_v45 }
  0x2c   :  { %v120_v52 = vsub.f32 %v118_v46, %v119_v48  ;;  %126 = vst.msk [vmem:[%s307_s4] sm:$0x1] %vm33_vm0, %v118_v46 }
  0x2d   :  { %v78_v49 = vadd.f32 %v77_v43, %v70_v39  ;;  %v98_v50 = vadd.f32 %v97_v44, %v90_v40  ;;  %v109_v53 = vmul.f32 8.0, %v107_v51 }
  0x2e   :  { %v122_v54 = vmul.f32 8.0, %v120_v52 }
  0x2f   :  { %79 = vst.msk [vmem:[%s306_s3] sm:$0x1] %vm33_vm0, %v78_v49  ;;  %99 = vst.msk [vmem:[%s308_s5] sm:$0x1] %vm33_vm0, %v98_v50  ;;  %v110_v55 = vmul.f32 %v109_v53, %v107_v51 }
  0x30   :  { %v123_v56 = vmul.f32 %v122_v54, %v120_v52 }
  0x36   :  { %v108_v57 = vld [vmem:[%s306_s3] sm:$0x1] }
  0x37   :  { %v121_v58 = vld [vmem:[%s308_s5] sm:$0x1]  ;;  %v111_v59 = vsub.f32 %v108_v57, %v110_v55 }
  0x38   :  { %v124_v60 = vsub.f32 %v121_v58, %v123_v56 }
  0x39   :  { %v113_v61 = vmul.f32 0.14285715, %v111_v59 }
  0x3a   :  { %v125_v62 = vmul.f32 0.14285715, %v124_v60 }
  0x3b   :  { %150 = vrsqrt.f32 %v113_v61 }
  0x3c   :  { %152 = vrsqrt.f32 %v125_v62 }
  0x45   :  { %v151_v63 = vpop.eup %150 }
  0x46   :  { %v153_v0 = vpop.eup %152  ;;  %116 = vst.msk [vmem:[%s306_s3] sm:$0x1] %vm33_vm0, %v151_v63 }
  0x47   :  { %128 = vst.msk [vmem:[%s308_s5] sm:$0x1] %vm33_vm0, %v153_v0 }
  0x48   :  { %145 = vsyncpa [#allocation5], 1 }

</bundles_post_ra>
